<compile_context>
chip_gen: v6e
topology: v6e:2x2x1
jax: 0.10.0
libtpu: 0.0.40
codegen_flags: <defaults>
</compile_context>

<pallas_src>
import functools

import jax
import jax.numpy as jnp
from jax.experimental import pallas as pl
from jax.experimental.pallas import tpu as pltpu


def _prosody_recon_loss_kernel(loss_type, tiles_per_core, tile_t,
                               lengths_ref,      # (B, 1) int32, clamped to [0, T]
                               dur_t_ref,        # (B, Tt) int duration targets
                               pitch_t_ref,      # (B, Tt) f32/bf16
                               energy_t_ref,     # (B, Tt) f32/bf16
                               logdur_p_ref,     # (B, Tt) f32/bf16
                               pitch_p_ref,      # (B, Tt) f32/bf16
                               energy_p_ref,     # (B, Tt) f32/bf16
                               out_ref,          # (1, 8, 128) f32 per-core partial sums
                               dur_acc, pitch_acc, energy_acc):  # (B, Tt) f32 scratch
    c = pl.program_id(0)          # core-split index ("parallel")
    t = pl.program_id(1)          # T-tile index ("arbitrary" reduction axis)
    nt = pl.num_programs(1)
    B, Tt = dur_acc.shape
    f32 = jnp.float32

    @pl.when(t == 0)
    def _init():
        dur_acc[...] = jnp.zeros_like(dur_acc)
        pitch_acc[...] = jnp.zeros_like(pitch_acc)
        energy_acc[...] = jnp.zeros_like(energy_acc)

    # Global column indices for this tile.  Lengths are clamped to [0, T] in the
    # wrapper, so any clamped / out-of-bounds padded columns get mask == False
    # (jnp.where, not multiply, so garbage values never poison the sum).
    col0 = (c * tiles_per_core + t) * tile_t
    ids = col0 + jax.lax.broadcasted_iota(jnp.int32, (B, Tt), 1)
    mask = ids < lengths_ref[...]                     # (B, Tt) bool

    def crit(tgt, pred):
        d = tgt - pred
        if loss_type == 'mae':
            return jnp.abs(d)
        elif loss_type == 'mse':
            return d * d
        else:
            raise ValueError(f'Unknown loss type: {loss_type}')

    dur_tgt = jnp.log(dur_t_ref[...].astype(f32) + 1.0)
    dur_acc[...] += jnp.where(
        mask, crit(dur_tgt, logdur_p_ref[...].astype(f32)), 0.0)
    pitch_acc[...] += jnp.where(
        mask, crit(pitch_t_ref[...].astype(f32), pitch_p_ref[...].astype(f32)), 0.0)
    energy_acc[...] += jnp.where(
        mask, crit(energy_t_ref[...].astype(f32), energy_p_ref[...].astype(f32)), 0.0)

    @pl.when(t == nt - 1)
    def _finalize():
        def full_sum(x):   # (B, Tt) -> (1, 1), the only XLU reductions in the kernel
            return jnp.sum(jnp.sum(x, axis=1, keepdims=True), axis=0, keepdims=True)

        d = full_sum(dur_acc[...])
        p = full_sum(pitch_acc[...])
        e = full_sum(energy_acc[...])

        # Pack the three partial numerators into lanes 0..2 of sublane 0 of one
        # lane-dense (1, 8, 128) slab (single unmasked store, one writeback DMA).
        sub = jax.lax.broadcasted_iota(jnp.int32, (1, 8, 128), 1)
        lane = jax.lax.broadcasted_iota(jnp.int32, (1, 8, 128), 2)
        row0 = sub == 0
        out_ref[...] = jnp.where(row0 & (lane == 0), d,
                       jnp.where(row0 & (lane == 1), p,
                       jnp.where(row0 & (lane == 2), e, 0.0)))


def _choose_tile_t(B, T, vmem_budget_bytes=24 << 20):
    """Largest 128-multiple tile that keeps double-buffered inputs + accumulators
    within a v7x-safe VMEM budget."""
    if T <= 128:
        return T  # full-dim block is always legal
    # Per tile column: 6 streamed inputs x 2 pipeline buffers + 3 f32 accumulators.
    bytes_per_col = (6 * 2 + 3) * B * 4
    max_cols = max(128, vmem_budget_bytes // bytes_per_col)
    tile = min(T, (max_cols // 128) * 128, 4096)
    return max(128, tile)


def prosody_recon_loss(input_lengths,
                       duration_targets,
                       pitch_targets,
                       energy_targets,
                       log_duration_predictions,
                       pitch_predictions,
                       energy_predictions,
                       loss_type='mae',
                       tile_t=None):
    """Returns (dur_loss, pitch_loss, energy_loss) as f32 scalars."""
    B, T = duration_targets.shape

    lengths_i32 = jnp.clip(input_lengths.astype(jnp.int32), 0, T)
    lengths_2d = lengths_i32.reshape(B, 1)

    if tile_t is None:
        tile_t = _choose_tile_t(B, T)
    num_tiles = pl.cdiv(T, tile_t)
    # Split the tile range across the 2 TensorCores (v7x) when it divides evenly;
    # runs serially (and still correctly) on single-core v5e/v6e.
    num_cores = 2 if (num_tiles % 2 == 0) else 1
    tiles_per_core = num_tiles // num_cores

    kernel = functools.partial(_prosody_recon_loss_kernel,
                               loss_type, tiles_per_core, tile_t)

    seq_spec = pl.BlockSpec((B, tile_t),
                            lambda c, t: (0, c * tiles_per_core + t))
    len_spec = pl.BlockSpec((B, 1), lambda c, t: (0, 0))
    out_spec = pl.BlockSpec((1, 8, 128), lambda c, t: (c, 0, 0))

    # Explicit VMEM budget (streamed inputs double-buffered + accumulators + slack).
    vmem_need = (6 * 2 + 3) * B * tile_t * 4 + (2 << 20)
    vmem_limit = int(min(max(vmem_need, 16 << 20), 48 << 20))

    partials = pl.pallas_call(
        kernel,
        out_shape=jax.ShapeDtypeStruct((num_cores, 8, 128), jnp.float32),
        grid_spec=pltpu.PrefetchScalarGridSpec(
            num_scalar_prefetch=0,
            grid=(num_cores, tiles_per_core),
            in_specs=[len_spec, seq_spec, seq_spec, seq_spec,
                      seq_spec, seq_spec, seq_spec],
            out_specs=out_spec,
            scratch_shapes=[pltpu.VMEM((B, tile_t), jnp.float32)] * 3),
        compiler_params=pltpu.CompilerParams(
            dimension_semantics=("parallel", "arbitrary"),
            vmem_limit_bytes=vmem_limit),
    )(lengths_2d,
      duration_targets,           # no wrapper-side upcasts: stream native dtypes
      pitch_targets,
      energy_targets,
      log_duration_predictions,
      pitch_predictions,
      energy_predictions)

    # Tiny cross-core combine + normalization (matches reference: no zero-length
    # guard — all-zero lengths yield inf/NaN exactly like the PyTorch module).
    sums = jnp.sum(partials, axis=(0, 1))                       # (128,)
    valid = jnp.sum(lengths_i32).astype(jnp.float32)
    inv_valid = 1.0 / valid
    return sums[0] * inv_valid, sums[1] * inv_valid, sums[2] * inv_valid


def _reference(input_lengths, duration_targets, pitch_targets, energy_targets,
               log_duration_predictions, pitch_predictions, energy_predictions,
               loss_type='mae'):
    B, T = duration_targets.shape
    f32 = jnp.float32
    pitch_targets = pitch_targets.astype(f32)
    energy_targets = energy_targets.astype(f32)
    log_duration_predictions = log_duration_predictions.astype(f32)
    pitch_predictions = pitch_predictions.astype(f32)
    energy_predictions = energy_predictions.astype(f32)
    ids = jnp.arange(T)[None, :]
    mask = (ids < input_lengths[:, None]).astype(f32)
    valid = mask.sum()
    crit = (lambda a, b: jnp.abs(a - b)) if loss_type == 'mae' else (lambda a, b: (a - b) ** 2)
    dur = jnp.sum(crit(jnp.log(duration_targets.astype(f32) + 1.0),
                       log_duration_predictions) * mask) / valid
    pitch = jnp.sum(crit(pitch_targets, pitch_predictions) * mask) / valid
    energy = jnp.sum(crit(energy_targets, energy_predictions) * mask) / valid
    return dur, pitch, energy


if __name__ == "__main__":
    key = jax.random.PRNGKey(0)

    # ---- Test 1: tiny shapes (single tile, single core-split), MAE, f32 inputs ----
    B, T = 2, 16
    k1, k2, k3, k4, k5, k6 = jax.random.split(key, 6)
    input_lengths = jnp.array([12, 16], dtype=jnp.int32)
    duration_targets = jax.random.randint(k1, (B, T), 1, 10, dtype=jnp.int32)
    pitch_targets = jax.random.normal(k2, (B, T), dtype=jnp.float32)
    energy_targets = jax.random.normal(k3, (B, T), dtype=jnp.float32)
    log_duration_predictions = jax.random.normal(k4, (B, T), dtype=jnp.float32)
    pitch_predictions = jax.random.normal(k5, (B, T), dtype=jnp.float32)
    energy_predictions = jax.random.normal(k6, (B, T), dtype=jnp.float32)

    out = prosody_recon_loss(input_lengths, duration_targets, pitch_targets,
                             energy_targets, log_duration_predictions,
                             pitch_predictions, energy_predictions,
                             loss_type='mae')
    out = jax.block_until_ready(out)
    ref = _reference(input_lengths, duration_targets, pitch_targets,
                     energy_targets, log_duration_predictions,
                     pitch_predictions, energy_predictions, loss_type='mae')
    for got, want in zip(out, ref):
        assert jnp.allclose(got, want, rtol=1e-5, atol=1e-5), (got, want)

    # ---- Test 2: tiled reduction + 2-way core split, MSE, bf16 streamed inputs ----
    B2, T2 = 4, 512
    j1, j2, j3, j4, j5, j6 = jax.random.split(jax.random.PRNGKey(1), 6)
    lengths2 = jnp.array([500, 512, 384, 100], dtype=jnp.int32)
    dur_t2 = jax.random.randint(j1, (B2, T2), 1, 10, dtype=jnp.int32)
    pitch_t2 = jax.random.normal(j2, (B2, T2), dtype=jnp.float32).astype(jnp.bfloat16)
    energy_t2 = jax.random.normal(j3, (B2, T2), dtype=jnp.float32).astype(jnp.bfloat16)
    logdur_p2 = jax.random.normal(j4, (B2, T2), dtype=jnp.float32).astype(jnp.bfloat16)
    pitch_p2 = jax.random.normal(j5, (B2, T2), dtype=jnp.float32).astype(jnp.bfloat16)
    energy_p2 = jax.random.normal(j6, (B2, T2), dtype=jnp.float32).astype(jnp.bfloat16)

    out2 = prosody_recon_loss(lengths2, dur_t2, pitch_t2, energy_t2,
                              logdur_p2, pitch_p2, energy_p2,
                              loss_type='mse', tile_t=128)   # 4 tiles -> 2 cores x 2
    out2 = jax.block_until_ready(out2)
    ref2 = _reference(lengths2, dur_t2, pitch_t2, energy_t2,
                      logdur_p2, pitch_p2, energy_p2, loss_type='mse')
    for got, want in zip(out2, ref2):
        assert jnp.allclose(got, want, rtol=1e-4, atol=1e-5), (got, want)

    print("KERNEL_OK")
</pallas_src>

<mosaic_0001>
module attributes {stable_mosaic.version = 11 : i64} {
  func.func @_prosody_recon_loss_kernel(%arg0: i32, %arg1: i32, %arg2: memref<2x1xi32, #tpu.memory_space<vmem>>, %arg3: memref<2x16xi32, #tpu.memory_space<vmem>>, %arg4: memref<2x16xf32, #tpu.memory_space<vmem>>, %arg5: memref<2x16xf32, #tpu.memory_space<vmem>>, %arg6: memref<2x16xf32, #tpu.memory_space<vmem>>, %arg7: memref<2x16xf32, #tpu.memory_space<vmem>>, %arg8: memref<2x16xf32, #tpu.memory_space<vmem>>, %arg9: memref<1x8x128xf32, #tpu.memory_space<vmem>>, %arg10: memref<2x16xf32, #tpu.memory_space<vmem>>, %arg11: memref<2x16xf32, #tpu.memory_space<vmem>>, %arg12: memref<2x16xf32, #tpu.memory_space<vmem>>) attributes {dimension_semantics = [#tpu.dimension_semantics<parallel>, #tpu.dimension_semantics<arbitrary>], iteration_bounds = array<i64: 1, 1>, scalar_prefetch = 0 : i64, scratch_operands = 3 : i64, tpu.core_type = #tpu.core_type<tc>, window_params = [{pipeline_mode = #tpu.pipeline_mode<synchronous>, transform_indices = @transform_0, window_bounds = array<i64: 2, 1>}, {transform_indices = @transform_1, window_bounds = array<i64: 2, 16>}, {transform_indices = @transform_2, window_bounds = array<i64: 2, 16>}, {transform_indices = @transform_3, window_bounds = array<i64: 2, 16>}, {transform_indices = @transform_4, window_bounds = array<i64: 2, 16>}, {transform_indices = @transform_5, window_bounds = array<i64: 2, 16>}, {transform_indices = @transform_6, window_bounds = array<i64: 2, 16>}, {transform_indices = @transform_7, window_bounds = array<i64: 1, 8, 128>}]} {
    %c0_i32 = arith.constant 0 : i32
    %0 = arith.cmpi eq, %arg1, %c0_i32 : i32
    %1 = arith.extui %0 : i1 to i32
    %c0_i32_0 = arith.constant 0 : i32
    %2 = arith.cmpi ne, %1, %c0_i32_0 : i32
    scf.if %2 {
      %cst_31 = arith.constant 0.000000e+00 : f32
      %46 = vector.broadcast %cst_31 : f32 to vector<2x16xf32>
      %c0_32 = arith.constant 0 : index
      %c0_33 = arith.constant 0 : index
      %47 = vector.load %arg10[%c0_32, %c0_33] : memref<2x16xf32, #tpu.memory_space<vmem>>, vector<2x16xf32>
      tpu.vector_store %arg10[%c0_32, %c0_33], %46 {strides = array<i32>} : memref<2x16xf32, #tpu.memory_space<vmem>>, vector<2x16xf32>,
      %cst_34 = arith.constant 0.000000e+00 : f32
      %48 = vector.broadcast %cst_34 : f32 to vector<2x16xf32>
      %c0_35 = arith.constant 0 : index
      %c0_36 = arith.constant 0 : index
      %49 = vector.load %arg11[%c0_35, %c0_36] : memref<2x16xf32, #tpu.memory_space<vmem>>, vector<2x16xf32>
      tpu.vector_store %arg11[%c0_35, %c0_36], %48 {strides = array<i32>} : memref<2x16xf32, #tpu.memory_space<vmem>>, vector<2x16xf32>,
      %cst_37 = arith.constant 0.000000e+00 : f32
      %50 = vector.broadcast %cst_37 : f32 to vector<2x16xf32>
      %c0_38 = arith.constant 0 : index
      %c0_39 = arith.constant 0 : index
      %51 = vector.load %arg12[%c0_38, %c0_39] : memref<2x16xf32, #tpu.memory_space<vmem>>, vector<2x16xf32>
      tpu.vector_store %arg12[%c0_38, %c0_39], %50 {strides = array<i32>} : memref<2x16xf32, #tpu.memory_space<vmem>>, vector<2x16xf32>,
    } else {
    }
    %c1_i32 = arith.constant 1 : i32
    %3 = arith.muli %arg0, %c1_i32 : i32
    %4 = arith.addi %3, %arg1 : i32
    %c16_i32 = arith.constant 16 : i32
    %5 = arith.muli %4, %c16_i32 : i32
    %6 = tpu.iota {dimensions = array<i32: 1>} : vector<2x16xi32>
    %7 = vector.broadcast %5 : i32 to vector<2x16xi32>
    %8 = arith.addi %7, %6 : vector<2x16xi32>
    %c0 = arith.constant 0 : index
    %c0_1 = arith.constant 0 : index
    %9 = vector.load %arg2[%c0, %c0_1] : memref<2x1xi32, #tpu.memory_space<vmem>>, vector<2x1xi32>
    %10 = vector.broadcast %9 : vector<2x1xi32> to vector<2x16xi32>
    %11 = arith.cmpi slt, %8, %10 : vector<2x16xi32>
    %c0_2 = arith.constant 0 : index
    %c0_3 = arith.constant 0 : index
    %12 = vector.load %arg3[%c0_2, %c0_3] : memref<2x16xi32, #tpu.memory_space<vmem>>, vector<2x16xi32>
    %13 = arith.sitofp %12 : vector<2x16xi32> to vector<2x16xf32>
    %cst = arith.constant 1.000000e+00 : f32
    %14 = vector.broadcast %cst : f32 to vector<2x16xf32>
    %15 = arith.addf %13, %14 : vector<2x16xf32>
    %16 = math.log %15 : vector<2x16xf32>
    %c0_4 = arith.constant 0 : index
    %c0_5 = arith.constant 0 : index
    %17 = vector.load %arg10[%c0_4, %c0_5] : memref<2x16xf32, #tpu.memory_space<vmem>>, vector<2x16xf32>
    %c0_6 = arith.constant 0 : index
    %c0_7 = arith.constant 0 : index
    %18 = vector.load %arg6[%c0_6, %c0_7] : memref<2x16xf32, #tpu.memory_space<vmem>>, vector<2x16xf32>
    %19 = arith.subf %16, %18 : vector<2x16xf32>
    %20 = math.absf %19 : vector<2x16xf32>
    %cst_8 = arith.constant 0.000000e+00 : f32
    %21 = vector.broadcast %cst_8 : f32 to vector<2x16xf32>
    %22 = arith.select %11, %20, %21 : vector<2x16xi1>, vector<2x16xf32>
    %23 = arith.addf %17, %22 : vector<2x16xf32>
    %c0_9 = arith.constant 0 : index
    %c0_10 = arith.constant 0 : index
    %24 = vector.load %arg10[%c0_9, %c0_10] : memref<2x16xf32, #tpu.memory_space<vmem>>, vector<2x16xf32>
    tpu.vector_store %arg10[%c0_9, %c0_10], %23 {strides = array<i32>} : memref<2x16xf32, #tpu.memory_space<vmem>>, vector<2x16xf32>,
    %c0_11 = arith.constant 0 : index
    %c0_12 = arith.constant 0 : index
    %25 = vector.load %arg11[%c0_11, %c0_12] : memref<2x16xf32, #tpu.memory_space<vmem>>, vector<2x16xf32>
    %c0_13 = arith.constant 0 : index
    %c0_14 = arith.constant 0 : index
    %26 = vector.load %arg4[%c0_13, %c0_14] : memref<2x16xf32, #tpu.memory_space<vmem>>, vector<2x16xf32>
    %c0_15 = arith.constant 0 : index
    %c0_16 = arith.constant 0 : index
    %27 = vector.load %arg7[%c0_15, %c0_16] : memref<2x16xf32, #tpu.memory_space<vmem>>, vector<2x16xf32>
    %28 = arith.subf %26, %27 : vector<2x16xf32>
    %29 = math.absf %28 : vector<2x16xf32>
    %cst_17 = arith.constant 0.000000e+00 : f32
    %30 = vector.broadcast %cst_17 : f32 to vector<2x16xf32>
    %31 = arith.select %11, %29, %30 : vector<2x16xi1>, vector<2x16xf32>
    %32 = arith.addf %25, %31 : vector<2x16xf32>
    %c0_18 = arith.constant 0 : index
    %c0_19 = arith.constant 0 : index
    %33 = vector.load %arg11[%c0_18, %c0_19] : memref<2x16xf32, #tpu.memory_space<vmem>>, vector<2x16xf32>
    tpu.vector_store %arg11[%c0_18, %c0_19], %32 {strides = array<i32>} : memref<2x16xf32, #tpu.memory_space<vmem>>, vector<2x16xf32>,
    %c0_20 = arith.constant 0 : index
    %c0_21 = arith.constant 0 : index
    %34 = vector.load %arg12[%c0_20, %c0_21] : memref<2x16xf32, #tpu.memory_space<vmem>>, vector<2x16xf32>
    %c0_22 = arith.constant 0 : index
    %c0_23 = arith.constant 0 : index
    %35 = vector.load %arg5[%c0_22, %c0_23] : memref<2x16xf32, #tpu.memory_space<vmem>>, vector<2x16xf32>
    %c0_24 = arith.constant 0 : index
    %c0_25 = arith.constant 0 : index
    %36 = vector.load %arg8[%c0_24, %c0_25] : memref<2x16xf32, #tpu.memory_space<vmem>>, vector<2x16xf32>
    %37 = arith.subf %35, %36 : vector<2x16xf32>
    %38 = math.absf %37 : vector<2x16xf32>
    %cst_26 = arith.constant 0.000000e+00 : f32
    %39 = vector.broadcast %cst_26 : f32 to vector<2x16xf32>
    %40 = arith.select %11, %38, %39 : vector<2x16xi1>, vector<2x16xf32>
    %41 = arith.addf %34, %40 : vector<2x16xf32>
    %c0_27 = arith.constant 0 : index
    %c0_28 = arith.constant 0 : index
    %42 = vector.load %arg12[%c0_27, %c0_28] : memref<2x16xf32, #tpu.memory_space<vmem>>, vector<2x16xf32>
    tpu.vector_store %arg12[%c0_27, %c0_28], %41 {strides = array<i32>} : memref<2x16xf32, #tpu.memory_space<vmem>>, vector<2x16xf32>,
    %c0_i32_29 = arith.constant 0 : i32
    %43 = arith.cmpi eq, %arg1, %c0_i32_29 : i32
    %44 = arith.extui %43 : i1 to i32
    %c0_i32_30 = arith.constant 0 : i32
    %45 = arith.cmpi ne, %44, %c0_i32_30 : i32
    scf.if %45 {
      %c0_31 = arith.constant 0 : index
      %c0_32 = arith.constant 0 : index
      %46 = vector.load %arg10[%c0_31, %c0_32] : memref<2x16xf32, #tpu.memory_space<vmem>>, vector<2x16xf32>
      %cst_33 = arith.constant dense<0.000000e+00> : vector<2xf32>
      %47 = vector.multi_reduction <add>, %46, %cst_33 [1] : vector<2x16xf32> to vector<2xf32>
      %48 = vector.shape_cast %47 : vector<2xf32> to vector<2x1xf32>
      %cst_34 = arith.constant dense<0.000000e+00> : vector<1xf32>
      %49 = vector.multi_reduction <add>, %48, %cst_34 [0] : vector<2x1xf32> to vector<1xf32>
      %50 = vector.shape_cast %49 : vector<1xf32> to vector<1x1xf32>
      %c0_35 = arith.constant 0 : index
      %c0_36 = arith.constant 0 : index
      %51 = vector.load %arg11[%c0_35, %c0_36] : memref<2x16xf32, #tpu.memory_space<vmem>>, vector<2x16xf32>
      %cst_37 = arith.constant dense<0.000000e+00> : vector<2xf32>
      %52 = vector.multi_reduction <add>, %51, %cst_37 [1] : vector<2x16xf32> to vector<2xf32>
      %53 = vector.shape_cast %52 : vector<2xf32> to vector<2x1xf32>
      %cst_38 = arith.constant dense<0.000000e+00> : vector<1xf32>
      %54 = vector.multi_reduction <add>, %53, %cst_38 [0] : vector<2x1xf32> to vector<1xf32>
      %55 = vector.shape_cast %54 : vector<1xf32> to vector<1x1xf32>
      %c0_39 = arith.constant 0 : index
      %c0_40 = arith.constant 0 : index
      %56 = vector.load %arg12[%c0_39, %c0_40] : memref<2x16xf32, #tpu.memory_space<vmem>>, vector<2x16xf32>
      %cst_41 = arith.constant dense<0.000000e+00> : vector<2xf32>
      %57 = vector.multi_reduction <add>, %56, %cst_41 [1] : vector<2x16xf32> to vector<2xf32>
      %58 = vector.shape_cast %57 : vector<2xf32> to vector<2x1xf32>
      %cst_42 = arith.constant dense<0.000000e+00> : vector<1xf32>
      %59 = vector.multi_reduction <add>, %58, %cst_42 [0] : vector<2x1xf32> to vector<1xf32>
      %60 = vector.shape_cast %59 : vector<1xf32> to vector<1x1xf32>
      %61 = tpu.iota {dimensions = array<i32: 1>} : vector<1x8x128xi32>
      %62 = tpu.iota {dimensions = array<i32: 2>} : vector<1x8x128xi32>
      %c0_i32_43 = arith.constant 0 : i32
      %63 = vector.broadcast %c0_i32_43 : i32 to vector<1x8x128xi32>
      %64 = arith.cmpi eq, %61, %63 : vector<1x8x128xi32>
      %c0_i32_44 = arith.constant 0 : i32
      %65 = vector.broadcast %c0_i32_44 : i32 to vector<1x8x128xi32>
      %66 = arith.cmpi eq, %62, %65 : vector<1x8x128xi32>
      %67 = arith.andi %64, %66 : vector<1x8x128xi1>
      %c1_i32_45 = arith.constant 1 : i32
      %68 = vector.broadcast %c1_i32_45 : i32 to vector<1x8x128xi32>
      %69 = arith.cmpi eq, %62, %68 : vector<1x8x128xi32>
      %70 = arith.andi %64, %69 : vector<1x8x128xi1>
      %c2_i32 = arith.constant 2 : i32
      %71 = vector.broadcast %c2_i32 : i32 to vector<1x8x128xi32>
      %72 = arith.cmpi eq, %62, %71 : vector<1x8x128xi32>
      %73 = arith.andi %64, %72 : vector<1x8x128xi1>
      %cst_46 = arith.constant 0.000000e+00 : f32
      %74 = vector.shape_cast %60 : vector<1x1xf32> to vector<1x1x1xf32>
      %75 = vector.broadcast %74 : vector<1x1x1xf32> to vector<1x8x128xf32>
      %76 = vector.broadcast %cst_46 : f32 to vector<1x8x128xf32>
      %77 = arith.select %73, %75, %76 : vector<1x8x128xi1>, vector<1x8x128xf32>
      %78 = vector.shape_cast %55 : vector<1x1xf32> to vector<1x1x1xf32>
      %79 = vector.broadcast %78 : vector<1x1x1xf32> to vector<1x8x128xf32>
      %80 = arith.select %70, %79, %77 : vector<1x8x128xi1>, vector<1x8x128xf32>
      %81 = vector.shape_cast %50 : vector<1x1xf32> to vector<1x1x1xf32>
      %82 = vector.broadcast %81 : vector<1x1x1xf32> to vector<1x8x128xf32>
      %83 = arith.select %67, %82, %80 : vector<1x8x128xi1>, vector<1x8x128xf32>
      %c0_47 = arith.constant 0 : index
      %c0_48 = arith.constant 0 : index
      %c0_49 = arith.constant 0 : index
      %84 = vector.load %arg9[%c0_47, %c0_48, %c0_49] : memref<1x8x128xf32, #tpu.memory_space<vmem>>, vector<1x8x128xf32>
      tpu.vector_store %arg9[%c0_47, %c0_48, %c0_49], %83 {strides = array<i32>} : memref<1x8x128xf32, #tpu.memory_space<vmem>>, vector<1x8x128xf32>,
    } else {
    }
    return
  }
  func.func @transform_0(%arg0: i32, %arg1: i32) -> (i32, i32) {
    %c0_i32 = arith.constant 0 : i32
    %c0_i32_0 = arith.constant 0 : i32
    %c0_i32_1 = arith.constant 0 : i32
    return %c0_i32, %c0_i32_0 : i32, i32
  }
  func.func @transform_1(%arg0: i32, %arg1: i32) -> (i32, i32) {
    %c1_i32 = arith.constant 1 : i32
    %0 = arith.muli %arg0, %c1_i32 : i32
    %1 = arith.addi %0, %arg1 : i32
    %c0_i32 = arith.constant 0 : i32
    %c0_i32_0 = arith.constant 0 : i32
    return %c0_i32, %1 : i32, i32
  }
  func.func @transform_2(%arg0: i32, %arg1: i32) -> (i32, i32) {
    %c1_i32 = arith.constant 1 : i32
    %0 = arith.muli %arg0, %c1_i32 : i32
    %1 = arith.addi %0, %arg1 : i32
    %c0_i32 = arith.constant 0 : i32
    %c0_i32_0 = arith.constant 0 : i32
    return %c0_i32, %1 : i32, i32
  }
  func.func @transform_3(%arg0: i32, %arg1: i32) -> (i32, i32) {
    %c1_i32 = arith.constant 1 : i32
    %0 = arith.muli %arg0, %c1_i32 : i32
    %1 = arith.addi %0, %arg1 : i32
    %c0_i32 = arith.constant 0 : i32
    %c0_i32_0 = arith.constant 0 : i32
    return %c0_i32, %1 : i32, i32
  }
  func.func @transform_4(%arg0: i32, %arg1: i32) -> (i32, i32) {
    %c1_i32 = arith.constant 1 : i32
    %0 = arith.muli %arg0, %c1_i32 : i32
    %1 = arith.addi %0, %arg1 : i32
    %c0_i32 = arith.constant 0 : i32
    %c0_i32_0 = arith.constant 0 : i32
    return %c0_i32, %1 : i32, i32
  }
  func.func @transform_5(%arg0: i32, %arg1: i32) -> (i32, i32) {
    %c1_i32 = arith.constant 1 : i32
    %0 = arith.muli %arg0, %c1_i32 : i32
    %1 = arith.addi %0, %arg1 : i32
    %c0_i32 = arith.constant 0 : i32
    %c0_i32_0 = arith.constant 0 : i32
    return %c0_i32, %1 : i32, i32
  }
  func.func @transform_6(%arg0: i32, %arg1: i32) -> (i32, i32) {
    %c1_i32 = arith.constant 1 : i32
    %0 = arith.muli %arg0, %c1_i32 : i32
    %1 = arith.addi %0, %arg1 : i32
    %c0_i32 = arith.constant 0 : i32
    %c0_i32_0 = arith.constant 0 : i32
    return %c0_i32, %1 : i32, i32
  }
  func.func @transform_7(%arg0: i32, %arg1: i32) -> (i32, i32, i32) {
    %c0_i32 = arith.constant 0 : i32
    %c0_i32_0 = arith.constant 0 : i32
    %c0_i32_1 = arith.constant 0 : i32
    return %arg0, %c0_i32, %c0_i32_0 : i32, i32, i32
  }
}

</mosaic_0001>

<bundles_post_ra>
// kernel: tpu_custom_call.1
= control target key start
LH: loop header
LB: loop body
LE: loop exit
PB: predicated region body
PF: predicated region fallthrough
CT: control target
= control target key end

     0   :  { %vm133_vm0 = vcmask 123904   ;;  %v305_v1 = vmov 0   ;;  %v306_v2 = vmov 0.0   ;;  %s384_s0 = inlined_call_operand.vmem [shape: s32[2,1], index: 0, kind: input, shape index: {}]   ;;  %s385_s1 = inlined_call_operand.vmem [shape: s32[2,16], index: 1, kind: input, shape index: {}]   ;;  %s386_s2 = inlined_call_operand.vmem [shape: f32[2,16], index: 2, kind: input, shape index: {}]   ;;  %s387_s3 = inlined_call_operand.vmem [shape: f32[2,16], index: 3, kind: input, shape index: {}]   ;;  %s388_s4 = inlined_call_operand.vmem [shape: f32[2,16], index: 4, kind: input, shape index: {}]   ;;  %s389_s5 = inlined_call_operand.vmem [shape: f32[2,16], index: 5, kind: input, shape index: {}]   ;;  %s390_s6 = inlined_call_operand.vmem [shape: f32[2,16], index: 6, kind: input, shape index: {}]   ;;  %s391_s7 = inlined_call_operand.hbm [shape: f32[1,8,128], index: 7, kind: output, shape index: {}]  }
   0x1   :  { %v143_v0 = vld [vmem:[%s384_s0] sm:$0x3]  ;;  %280 = vset.pattern.permute.xlu0 %v305_v1  ;;  %134 = vst.msk [vmem:[#allocation2] sm:$0x3] %vm133_vm0, %v306_v2  ;;  %135 = vst.msk [vmem:[#allocation3] sm:$0x3] %vm133_vm0, %v306_v2 }
   0x2   :  { %145 = vperm.xlu0 %280, %v143_v0   ;;  %136 = vst.msk [vmem:[#allocation4] sm:$0x3] %vm133_vm0, %v306_v2 }
   0x3   :  { %12 = vsyncpa [#allocation6], 0  ;;  %v148_v3 = vld [vmem:[%s385_s1] sm:$0x3]  ;;  %v139_v13 = vlaneseq  ;;  %vm184_vm2 = vcmask 1041408  }
   0x4   :  { %v149_v4 = vcvt.s32.f32 %v148_v3  ;;  %v154_v8 = vld [vmem:[%s388_s4] sm:$0x3] }
   0x5   :  { %v162_v9 = vld [vmem:[%s386_s2] sm:$0x3]  ;;  %v140_v17 = vand.u32 127, %v139_v13  ;;  %v215_v43 = vshrl.u32 %v139_v13, 7  ;;  %s307_s2 = smov [#allocation5]  }
   0x6   :  { %v150_v5 = vadd.f32 1.0, %v149_v4  ;;  %v163_v10 = vld [vmem:[%s389_s5] sm:$0x3] }
   0x7   :  { %v170_v11 = vld [vmem:[%s387_s3] sm:$0x3]  ;;  %v164_v15 = vsub.f32 %v162_v9, %v163_v10  ;;  %vm216_vm3 = vcmp.eq.s32.totalorder %v215_v43, 0  ;;  %vm221_vm4 = vcmp.eq.s32.totalorder %v140_v17, 2  ;;  %vm219_vm5 = vcmp.eq.s32.totalorder %v140_v17, 1  ;;  %s233_s3 = sshll.u32 %s307_s2, 4  ;;  %s234_s3 = int_to_ptr.vmem [resolvable:$true] %s233_s3 }
   0x8   :  { %281 = vlog2.f32 %v150_v5  ;;  %v171_v12 = vld [vmem:[%s390_s6] sm:$0x3]  ;;  %v153_v22 = vld [vmem:[#allocation2] sm:$0x3]  ;;  %v161_v23 = vld [vmem:[#allocation3] sm:$0x3]  ;;  %p288_p1 = scmp.lt.s32.totalorder %s234_s3, %s234_s3 }
   0x9   :  { %v172_v16 = vsub.f32 %v170_v11, %v171_v12  ;;  %v165_v19 = vand.u32 2147483647, %v164_v15  ;;  %v169_v24 = vld [vmem:[#allocation4] sm:$0x3]  ;;  %vm222_vm6 = vmand %vm216_vm3, %vm221_vm4  ;;  %vm217_vm7 = vcmp.eq.s32.totalorder %v140_v17, 0  ;;  %s283_s4 = scalar_lea.vmem %s234_s3, 128 }
   0xa   :  { %vm220_vm8 = vmand %vm216_vm3, %vm219_vm5  ;;  %p284_p0 = scmp.ne.s32.totalorder %s234_s3, %s283_s4  ;;  %p289_p2 = scmp.lt.s32.totalorder %s283_s4, %s283_s4 }
   0xb   :  { %v173_v20 = vand.u32 2147483647, %v172_v16  ;;  %vm218_vm9 = vmand %vm216_vm3, %vm217_vm7 }
   0xc   :  { %p290_p3 = por %p289_p2, %p288_p1 }
   0xe   :  { %p291_p4 = pnand %p290_p3, %p284_p0 }
  0x15   :  { %v282_v6 = vpop.eup %281 }
  0x16   :  { %v152_v7 = vmul.f32 0.6931472, %v282_v6 }
  0x18   :  { %v155_v14 = vsub.f32 %v152_v7, %v154_v8 }
  0x1a   :  { %v156_v18 = vand.u32 2147483647, %v155_v14 }
  0x7d   :  { %v146_v21 = vpop.permute.xlu0 %145 }
  0x7e   :  { %vm147_vm1 = vcmp.lt.s32.totalorder %v140_v17, %v146_v21 }
  0x7f   :  { %v157_v25 = vsel %vm147_vm1, %v156_v18, 0.0  ;;  %v166_v26 = vsel %vm147_vm1, %v165_v19, 0.0  ;;  %v174_v27 = vsel %vm147_vm1, %v173_v20, 0.0 }
  0x80   :  { %v158_v28 = vadd.f32 %v157_v25, %v153_v22  ;;  %v167_v29 = vadd.f32 %v166_v26, %v161_v23  ;;  %v175_v30 = vadd.f32 %v174_v27, %v169_v24 }
  0x82   :  { %160 = vst.msk [vmem:[#allocation2] sm:$0x3] %vm133_vm0, %v158_v28  ;;  %168 = vst.msk [vmem:[#allocation3] sm:$0x3] %vm133_vm0, %v167_v29 }
  0x83   :  { %176 = vst.msk [vmem:[#allocation4] sm:$0x3] %vm133_vm0, %v175_v30 }
  0x89   :  { %v192_v32 = vld [vmem:[#allocation3] sm:$0x3]  ;;  %v180_v35 = vld [vmem:[#allocation2] sm:$0x3] }
  0x8a   :  { %v203_v31 = vld [vmem:[#allocation4] sm:$0x3]  ;;  %v193_v34 = vsel %vm133_vm0, %v192_v32, 0.0  ;;  %v181_v36 = vsel %vm133_vm0, %v180_v35, 0.0 }
  0x8b   :  { %v204_v33 = vsel %vm133_vm0, %v203_v31, 0.0  ;;  %194 = vadd.xlane.f32.xlu1 %v193_v34 }
  0x8c   :  { %205 = vadd.xlane.f32.xlu0 %v204_v33 }
  0x8f   :  { %182 = vadd.xlane.f32.xlu1 %v181_v36 }
 0x114   :  { %v195_v38 = vpop.xlane.xlu1 %194 }
 0x115   :  { %v206_v37 = vpop.xlane.xlu0 %205  ;;  %v196_v40 = vsel %vm184_vm2, %v195_v38, 0.0 }
 0x116   :  { %v207_v39 = vsel %vm184_vm2, %v206_v37, 0.0  ;;  %v197_v42 = vrot.slane %v196_v40, 4 }
 0x117   :  { %v208_v41 = vrot.slane %v207_v39, 4 }
 0x118   :  { %v198_v45 = vadd.f32 %v197_v42, %v196_v40  ;;  %v183_v46 = vpop.xlane.xlu1 %182 }
 0x119   :  { %v209_v44 = vadd.f32 %v208_v41, %v207_v39  ;;  %v185_v47 = vsel %vm184_vm2, %v183_v46, 0.0 }
 0x11a   :  { %v199_v49 = vrot.slane %v198_v45, 2  ;;  %v186_v50 = vrot.slane %v185_v47, 4 }
 0x11b   :  { %v210_v48 = vrot.slane %v209_v44, 2 }
 0x11c   :  { %v200_v52 = vadd.f32 %v199_v49, %v198_v45  ;;  %v187_v53 = vadd.f32 %v186_v50, %v185_v47 }
 0x11d   :  { %v211_v51 = vadd.f32 %v210_v48, %v209_v44 }
 0x11e   :  { %v201_v55 = vrot.slane %v200_v52, 1  ;;  %v188_v56 = vrot.slane %v187_v53, 2 }
 0x11f   :  { %v212_v54 = vrot.slane %v211_v51, 1 }
 0x120   :  { %v189_v58 = vadd.f32 %v188_v56, %v187_v53  ;;  %v202_v59 = vadd.f32 %v201_v55, %v200_v52 }
 0x121   :  { %v213_v57 = vadd.f32 %v212_v54, %v211_v51 }
 0x122   :  { %v190_v60 = vrot.slane %v189_v58, 1 }
 0x123   :  { %v223_v61 = vsel %vm222_vm6, %v213_v57, 0.0 }
 0x124   :  { %v191_v62 = vadd.f32 %v190_v60, %v189_v58  ;;  %v224_v63 = vsel %vm220_vm8, %v202_v59, %v223_v61 }
 0x126   :  { %v225_v0 = vsel %vm218_vm9, %v191_v62, %v224_v63 }
 0x127   :  { %226 = vst [vmem:[#allocation5] sm:$0xff] %v225_v0 }
 0x128   :  { %294 = shalt.err (!%p291_p4)
}
 0x129   :  { %236 = dma.vmem_to_hbm [thread:$0]  %s234_s3, 128, %s391_s7, [#allocation6]  }
 0x12a   :  { %303 = dma.done.wait [#allocation6], 128  }
 0x12b   :  { %304 = vsyncadd [#allocation6], 4294967168 }
 0x12c   :  { %240 = vsyncpa [#allocation6], 1 }

</bundles_post_ra>
